<compile_context>
chip_gen: v7x
topology: tpu7x:2x2x1
jax: 0.10.0
libtpu: 0.0.40
codegen_flags: <defaults>
</compile_context>

<pallas_src>
import functools

import jax
import jax.numpy as jnp
from jax.experimental import pallas as pl
from jax.experimental.pallas import tpu as pltpu

INPUT_DIM = 96
HIDDEN_DIM = 128
OUTPUT_DIM = 2


def _mlp_kernel(x_ref, w1_ref, b1_ref, w2_ref, b2_ref, w3_ref, b3_ref, o_ref):
    # Fused fc1+ReLU -> fc2+ReLU -> fc3 for one batch tile.
    # x / weights may be bf16; all three jnp.dot calls accumulate in f32 on
    # the MXU and biases are added in f32, so only matmul inputs are low-prec.
    cdt = w1_ref.dtype                                # compute dtype (bf16 or f32)
    x = x_ref[...]                                    # (TB, 96)
    h1 = jnp.dot(x, w1_ref[...], preferred_element_type=jnp.float32) + b1_ref[...]
    h1 = jnp.maximum(h1, 0.0).astype(cdt)             # ReLU, back to compute dtype
    # TODO(synk): nn.Dropout omitted (identity in eval); training-mode dropout
    # would use pltpu.prng_seed + pltpu.stateful_bernoulli here.
    h2 = jnp.dot(h1, w2_ref[...], preferred_element_type=jnp.float32) + b2_ref[...]
    h2 = jnp.maximum(h2, 0.0).astype(cdt)
    # TODO(synk): if a bundle dump ever shows the MXU as the binding slot, this
    # 128->2 matmul could move to the VPU/XLU (broadcast + lane reduce); left
    # on the MXU since it is off the critical path today.
    out = jnp.dot(h2, w3_ref[...], preferred_element_type=jnp.float32) + b3_ref[...]
    o_ref[...] = out.astype(o_ref.dtype)


def _round_up(n, m):
    return ((n + m - 1) // m) * m


def _num_tensorcores():
    """Best-effort query of TensorCores per chip (2 on v7x, 1 on v5e/v6e)."""
    try:
        info = pltpu.get_tpu_info()
    except Exception:
        return 1
    for name in ("num_cores", "core_count", "num_tensorcores",
                 "cores_per_chip", "tensorcore_count"):
        n = getattr(info, name, None)
        if n is None:
            continue
        try:
            n = int(n)
        except (TypeError, ValueError):
            continue
        if 1 <= n <= 16:
            return n
    return 1


def _choose_tile_b(B, num_cores):
    """Batch tile policy (device aware, per perf review):
      * single-TC chips (v5e/v6e): one tile when the (8-rounded) batch is
        <= 1024 rows (no forced split); otherwise 512/1024-row tiles so the
        grid has >= 3 steps and the x DMA pipelines behind compute.
      * multi-TC chips (v7x): keep >= num_cores grid points when the batch
        allows so the batch axis can shard across TensorCores.
    Tiles are either the full padded batch or a multiple of 16 (bf16-safe)."""
    B8 = _round_up(B, 8)
    if num_cores <= 1:
        if B8 <= 1024:
            return B8
        if B8 <= 4096:
            return 512
        return 1024
    if B8 <= 16 * num_cores:
        return B8
    if B8 <= 1024 * num_cores:
        return _round_up(-(-B8 // num_cores), 16)
    return 1024


@functools.partial(jax.jit, static_argnames=("tile_b", "use_bf16", "core_parallel"))
def embedding_classifier_forward(x, params, *, tile_b=None, use_bf16=True,
                                 core_parallel=None):
    """x: [B, INPUT_DIM] float32. params: dict of (w1,b1,w2,b2,w3,b3) with
    PyTorch Linear convention w_i of shape [out, in].
    use_bf16=True (default) runs bf16-input / f32-accumulate matmuls;
    use_bf16=False keeps exact f32 parity with the PyTorch reference."""
    B, D = x.shape
    assert D == INPUT_DIM

    num_cores = _num_tensorcores()
    if tile_b is None:
        tile_b = _choose_tile_b(B, num_cores)
    # tile_b is either the full padded batch or a multiple of 16, so both f32
    # (8-row sublane) and bf16 (16-row packed) layouts are legal.
    assert tile_b % 8 == 0, "tile_b must be a multiple of 8"

    # Pad batch up to a multiple of the tile (sublane-friendly). Padded rows
    # produce ReLU(bias) garbage but are sliced off below.
    B_pad = _round_up(B, tile_b)
    if B_pad != B:
        x = jnp.pad(x, ((0, B_pad - B), (0, 0)))

    grid = (B_pad // tile_b,)
    if core_parallel is None:
        core_parallel = (num_cores >= 2) and (grid[0] >= num_cores)

    cdt = jnp.bfloat16 if use_bf16 else jnp.float32

    # Transpose weights to [in, out] for x @ W (compute dtype); biases stay
    # f32 (1, out) rows and are added to the f32 accumulator in the kernel.
    w1 = params["w1"].T.astype(cdt)                   # (96, 128)
    w2 = params["w2"].T.astype(cdt)                   # (128, 128)
    w3 = params["w3"].T.astype(cdt)                   # (128, 2)
    b1 = params["b1"][None, :].astype(jnp.float32)    # (1, 128)
    b2 = params["b2"][None, :].astype(jnp.float32)    # (1, 128)
    b3 = params["b3"][None, :].astype(jnp.float32)    # (1, 2)
    x = x.astype(cdt)

    itemsize = jnp.dtype(cdt).itemsize
    flops = 2 * B_pad * (INPUT_DIM * HIDDEN_DIM
                         + HIDDEN_DIM * HIDDEN_DIM
                         + HIDDEN_DIM * OUTPUT_DIM)
    weight_bytes = itemsize * (INPUT_DIM * HIDDEN_DIM
                               + HIDDEN_DIM * HIDDEN_DIM
                               + HIDDEN_DIM * OUTPUT_DIM) \
                   + 4 * (HIDDEN_DIM + HIDDEN_DIM + OUTPUT_DIM)
    bytes_accessed = (B_pad * INPUT_DIM * itemsize
                      + B_pad * OUTPUT_DIM * 4
                      + weight_bytes)

    dim_sem = (pltpu.CORE_PARALLEL,) if core_parallel else ("parallel",)

    out = pl.pallas_call(
        _mlp_kernel,
        out_shape=jax.ShapeDtypeStruct((B_pad, OUTPUT_DIM), jnp.float32),
        grid_spec=pltpu.PrefetchScalarGridSpec(
            num_scalar_prefetch=0,
            grid=grid,
            in_specs=[
                # x tile. TODO(synk): on v5e, if a bundle dump shows exposed
                # DMA waits after the bf16 change, add
                # pipeline_mode=pl.Buffered(3) here.
                pl.BlockSpec((tile_b, INPUT_DIM), lambda i: (i, 0)),
                # Constant index_maps -> weights/biases fetched once and
                # resident across the whole batch grid (no per-step re-DMA).
                pl.BlockSpec((INPUT_DIM, HIDDEN_DIM), lambda i: (0, 0)),   # w1
                pl.BlockSpec((1, HIDDEN_DIM), lambda i: (0, 0)),           # b1
                pl.BlockSpec((HIDDEN_DIM, HIDDEN_DIM), lambda i: (0, 0)),  # w2
                pl.BlockSpec((1, HIDDEN_DIM), lambda i: (0, 0)),           # b2
                pl.BlockSpec((HIDDEN_DIM, OUTPUT_DIM), lambda i: (0, 0)),  # w3
                pl.BlockSpec((1, OUTPUT_DIM), lambda i: (0, 0)),           # b3
            ],
            # Narrow (tile_b, 2) output kept as-is: padding it to 128 lanes
            # would more than double HBM traffic for a memory-bound kernel.
            out_specs=pl.BlockSpec((tile_b, OUTPUT_DIM), lambda i: (i, 0)),
        ),
        compiler_params=pltpu.CompilerParams(dimension_semantics=dim_sem),
        cost_estimate=pl.CostEstimate(
            flops=flops, transcendentals=0, bytes_accessed=bytes_accessed),
    )(x, w1, b1, w2, b2, w3, b3)

    return out[:B]


def init_params(key):
    """Deterministic init mimicking nn.Linear shapes: w [out,in], b [out]."""
    k = jax.random.split(key, 6)

    def uinit(kk, shape, fan_in):
        bound = 1.0 / jnp.sqrt(fan_in)
        return jax.random.uniform(kk, shape, jnp.float32, -bound, bound)

    return {
        "w1": uinit(k[0], (HIDDEN_DIM, INPUT_DIM), INPUT_DIM),
        "b1": uinit(k[1], (HIDDEN_DIM,), INPUT_DIM),
        "w2": uinit(k[2], (HIDDEN_DIM, HIDDEN_DIM), HIDDEN_DIM),
        "b2": uinit(k[3], (HIDDEN_DIM,), HIDDEN_DIM),
        "w3": uinit(k[4], (OUTPUT_DIM, HIDDEN_DIM), HIDDEN_DIM),
        "b3": uinit(k[5], (OUTPUT_DIM,), HIDDEN_DIM),
    }


def _ref_forward(x, p):
    """Pure f32 reference (matches PyTorch eval-mode forward)."""
    h1 = jnp.maximum(x @ p["w1"].T + p["b1"], 0.0)
    h2 = jnp.maximum(h1 @ p["w2"].T + p["b2"], 0.0)
    return h2 @ p["w3"].T + p["b3"]


def _ref_forward_bf16(x, p):
    """Reference matching the kernel's bf16-input / f32-accumulate math."""
    bf = jnp.bfloat16
    h1 = jnp.dot(x.astype(bf), p["w1"].T.astype(bf),
                 preferred_element_type=jnp.float32) + p["b1"]
    h1 = jnp.maximum(h1, 0.0)
    h2 = jnp.dot(h1.astype(bf), p["w2"].T.astype(bf),
                 preferred_element_type=jnp.float32) + p["b2"]
    h2 = jnp.maximum(h2, 0.0)
    return jnp.dot(h2.astype(bf), p["w3"].T.astype(bf),
                   preferred_element_type=jnp.float32) + p["b3"]


if __name__ == "__main__":
    key = jax.random.PRNGKey(0)
    kx, kp = jax.random.split(key)
    params = init_params(kp)

    # Small demo shapes: single-tile case and a padded (batch % 8 != 0) case.
    for batch in (8, 50):
        x = jax.random.normal(kx, (batch, INPUT_DIM), dtype=jnp.float32)

        # Exact-parity f32 path.
        out_f32 = embedding_classifier_forward(x, params, use_bf16=False)
        jax.block_until_ready(out_f32)
        ref_f32 = _ref_forward(x, params)
        assert out_f32.shape == (batch, OUTPUT_DIM)
        assert jnp.allclose(out_f32, ref_f32, atol=1e-4, rtol=1e-4), "f32 mismatch"

        # Default fast path: bf16 inputs, f32 accumulation.
        out_bf16 = embedding_classifier_forward(x, params)
        jax.block_until_ready(out_bf16)
        ref_bf16 = _ref_forward_bf16(x, params)
        assert out_bf16.shape == (batch, OUTPUT_DIM)
        assert jnp.allclose(out_bf16, ref_bf16, atol=2e-2, rtol=2e-2), "bf16 mismatch"

    print("KERNEL_OK")
</pallas_src>

<mosaic_0001>
module attributes {stable_mosaic.version = 11 : i64} {
  func.func @_mlp_kernel(%arg0: i32, %arg1: memref<8x96xf32, #tpu.memory_space<vmem>>, %arg2: memref<96x128xf32, #tpu.memory_space<vmem>>, %arg3: memref<1x128xf32, #tpu.memory_space<vmem>>, %arg4: memref<128x128xf32, #tpu.memory_space<vmem>>, %arg5: memref<1x128xf32, #tpu.memory_space<vmem>>, %arg6: memref<128x2xf32, #tpu.memory_space<vmem>>, %arg7: memref<1x2xf32, #tpu.memory_space<vmem>>, %arg8: memref<8x2xf32, #tpu.memory_space<vmem>>) attributes {dimension_semantics = [#tpu.dimension_semantics<parallel>], iteration_bounds = array<i64: 1>, scalar_prefetch = 0 : i64, scratch_operands = 0 : i64, tpu.core_type = #tpu.core_type<tc>, window_params = [{transform_indices = @transform_0, window_bounds = array<i64: 8, 96>}, {pipeline_mode = #tpu.pipeline_mode<synchronous>, transform_indices = @transform_1, window_bounds = array<i64: 96, 128>}, {pipeline_mode = #tpu.pipeline_mode<synchronous>, transform_indices = @transform_2, window_bounds = array<i64: 1, 128>}, {pipeline_mode = #tpu.pipeline_mode<synchronous>, transform_indices = @transform_3, window_bounds = array<i64: 128, 128>}, {pipeline_mode = #tpu.pipeline_mode<synchronous>, transform_indices = @transform_4, window_bounds = array<i64: 1, 128>}, {pipeline_mode = #tpu.pipeline_mode<synchronous>, transform_indices = @transform_5, window_bounds = array<i64: 128, 2>}, {pipeline_mode = #tpu.pipeline_mode<synchronous>, transform_indices = @transform_6, window_bounds = array<i64: 1, 2>}, {transform_indices = @transform_7, window_bounds = array<i64: 8, 2>}]} {
    %c0 = arith.constant 0 : index
    %c0_0 = arith.constant 0 : index
    %0 = vector.load %arg1[%c0, %c0_0] : memref<8x96xf32, #tpu.memory_space<vmem>>, vector<8x96xf32>
    %c0_1 = arith.constant 0 : index
    %c0_2 = arith.constant 0 : index
    %1 = vector.load %arg2[%c0_1, %c0_2] : memref<96x128xf32, #tpu.memory_space<vmem>>, vector<96x128xf32>
    %cst = arith.constant dense<0.000000e+00> : vector<8x128xf32>
    %2 = tpu.matmul %0, %1, %cst {dimension_numbers = #tpu.dot_dimension_numbers<[1], [0], [0], [1], [0, 0, 1, 1], [], []>} : vector<8x96xf32>, vector<96x128xf32>, vector<8x128xf32> -> vector<8x128xf32>
    %c0_3 = arith.constant 0 : index
    %c0_4 = arith.constant 0 : index
    %3 = vector.load %arg3[%c0_3, %c0_4] : memref<1x128xf32, #tpu.memory_space<vmem>>, vector<1x128xf32>
    %4 = vector.broadcast %3 : vector<1x128xf32> to vector<8x128xf32>
    %5 = arith.addf %2, %4 : vector<8x128xf32>
    %cst_5 = arith.constant 0.000000e+00 : f32
    %6 = vector.broadcast %cst_5 : f32 to vector<8x128xf32>
    %7 = arith.maximumf %5, %6 : vector<8x128xf32>
    %c0_6 = arith.constant 0 : index
    %c0_7 = arith.constant 0 : index
    %8 = vector.load %arg4[%c0_6, %c0_7] : memref<128x128xf32, #tpu.memory_space<vmem>>, vector<128x128xf32>
    %cst_8 = arith.constant dense<0.000000e+00> : vector<8x128xf32>
    %9 = tpu.matmul %7, %8, %cst_8 {dimension_numbers = #tpu.dot_dimension_numbers<[1], [0], [0], [1], [0, 0, 1, 1], [], []>} : vector<8x128xf32>, vector<128x128xf32>, vector<8x128xf32> -> vector<8x128xf32>
    %c0_9 = arith.constant 0 : index
    %c0_10 = arith.constant 0 : index
    %10 = vector.load %arg5[%c0_9, %c0_10] : memref<1x128xf32, #tpu.memory_space<vmem>>, vector<1x128xf32>
    %11 = vector.broadcast %10 : vector<1x128xf32> to vector<8x128xf32>
    %12 = arith.addf %9, %11 : vector<8x128xf32>
    %cst_11 = arith.constant 0.000000e+00 : f32
    %13 = vector.broadcast %cst_11 : f32 to vector<8x128xf32>
    %14 = arith.maximumf %12, %13 : vector<8x128xf32>
    %c0_12 = arith.constant 0 : index
    %c0_13 = arith.constant 0 : index
    %15 = vector.load %arg6[%c0_12, %c0_13] : memref<128x2xf32, #tpu.memory_space<vmem>>, vector<128x2xf32>
    %cst_14 = arith.constant dense<0.000000e+00> : vector<8x2xf32>
    %16 = tpu.matmul %14, %15, %cst_14 {dimension_numbers = #tpu.dot_dimension_numbers<[1], [0], [0], [1], [0, 0, 1, 1], [], []>} : vector<8x128xf32>, vector<128x2xf32>, vector<8x2xf32> -> vector<8x2xf32>
    %c0_15 = arith.constant 0 : index
    %c0_16 = arith.constant 0 : index
    %17 = vector.load %arg7[%c0_15, %c0_16] : memref<1x2xf32, #tpu.memory_space<vmem>>, vector<1x2xf32>
    %18 = vector.broadcast %17 : vector<1x2xf32> to vector<8x2xf32>
    %19 = arith.addf %16, %18 : vector<8x2xf32>
    %c0_17 = arith.constant 0 : index
    %c0_18 = arith.constant 0 : index
    %20 = vector.load %arg8[%c0_17, %c0_18] : memref<8x2xf32, #tpu.memory_space<vmem>>, vector<8x2xf32>
    tpu.vector_store %arg8[%c0_17, %c0_18], %19 {strides = array<i32>} : memref<8x2xf32, #tpu.memory_space<vmem>>, vector<8x2xf32>,
    return
  }
  func.func @transform_0(%arg0: i32) -> (i32, i32) {
    %c0_i32 = arith.constant 0 : i32
    %c0_i32_0 = arith.constant 0 : i32
    return %arg0, %c0_i32 : i32, i32
  }
  func.func @transform_1(%arg0: i32) -> (i32, i32) {
    %c0_i32 = arith.constant 0 : i32
    %c0_i32_0 = arith.constant 0 : i32
    %c0_i32_1 = arith.constant 0 : i32
    return %c0_i32, %c0_i32_0 : i32, i32
  }
  func.func @transform_2(%arg0: i32) -> (i32, i32) {
    %c0_i32 = arith.constant 0 : i32
    %c0_i32_0 = arith.constant 0 : i32
    %c0_i32_1 = arith.constant 0 : i32
    return %c0_i32, %c0_i32_0 : i32, i32
  }
  func.func @transform_3(%arg0: i32) -> (i32, i32) {
    %c0_i32 = arith.constant 0 : i32
    %c0_i32_0 = arith.constant 0 : i32
    %c0_i32_1 = arith.constant 0 : i32
    return %c0_i32, %c0_i32_0 : i32, i32
  }
  func.func @transform_4(%arg0: i32) -> (i32, i32) {
    %c0_i32 = arith.constant 0 : i32
    %c0_i32_0 = arith.constant 0 : i32
    %c0_i32_1 = arith.constant 0 : i32
    return %c0_i32, %c0_i32_0 : i32, i32
  }
  func.func @transform_5(%arg0: i32) -> (i32, i32) {
    %c0_i32 = arith.constant 0 : i32
    %c0_i32_0 = arith.constant 0 : i32
    %c0_i32_1 = arith.constant 0 : i32
    return %c0_i32, %c0_i32_0 : i32, i32
  }
  func.func @transform_6(%arg0: i32) -> (i32, i32) {
    %c0_i32 = arith.constant 0 : i32
    %c0_i32_0 = arith.constant 0 : i32
    %c0_i32_1 = arith.constant 0 : i32
    return %c0_i32, %c0_i32_0 : i32, i32
  }
  func.func @transform_7(%arg0: i32) -> (i32, i32) {
    %c0_i32 = arith.constant 0 : i32
    %c0_i32_0 = arith.constant 0 : i32
    return %arg0, %c0_i32 : i32, i32
  }
}

</mosaic_0001>

<bundles_post_ra>
// kernel: embedding_classifier_forward.1
= control target key start
LH: loop header
LB: loop body
LE: loop exit
PB: predicated region body
PF: predicated region fallthrough
CT: control target
= control target key end

     0   :  { %v531_v0 = vmov 0.0|0.0   ;;  %vm532_vm0 = vmmov 0   ;;  %v533_v4 = vmov 0.0   ;;  %vm46_vm1 = vcmask 785408   ;;  %s749_s1 = inlined_call_operand.vmem [shape: f32[96,128], index: 1, kind: input, shape index: {}]   ;;  %s750_s3 = inlined_call_operand.vmem [shape: f32[128,128], index: 3, kind: input, shape index: {}]   ;;  %s751_s0 = inlined_call_operand.vmem [shape: f32[8,96], index: 0, kind: input, shape index: {}]   ;;  %s752_s5 = inlined_call_operand.vmem [shape: f32[128,2], index: 5, kind: input, shape index: {}]   ;;  %s753_s2 = inlined_call_operand.vmem [shape: f32[1,128], index: 2, kind: input, shape index: {}]   ;;  %s754_s4 = inlined_call_operand.vmem [shape: f32[1,128], index: 4, kind: input, shape index: {}]   ;;  %s755_s6 = inlined_call_operand.vmem [shape: f32[1,2], index: 6, kind: input, shape index: {}]   ;;  %s756_s7 = inlined_call_operand.vmem [shape: f32[8,2], index: 7, kind: output, shape index: {}]  }
   0x1   :  { %462 = vmatprep.subr.bf16.mxu0 %v531_v0  ;;  %v27_v1 = vld [vmem:[%s749_s1] sm:$0xff]  ;;  %v28_v2 = vld [vmem:[%s749_s1 + $0x8] sm:$0xff]  ;;  %v29_v3 = vld [vmem:[%s749_s1 + $0x10] sm:$0xff]  ;;  %389 = vmatprep.mubr.msk.f32.mxu0 %vm532_vm0, %v533_v4  ;;  %vm308_vm2 = vcmask 15360  }
   0x2   :  { %v463_v5 = vpack.c.bf16 %v28_v2, %v27_v1  ;;  %v30_v6 = vld [vmem:[%s749_s1 + $0x18] sm:$0xff]  ;;  %480 = vmatprep.subr.bf16.mxu1 %v531_v0  ;;  %424 = vmatprep.mubr.msk.f32.mxu1 %vm532_vm0, %v533_v4  ;;  %v31_v8 = vld [vmem:[%s749_s1 + $0x20] sm:$0xff]  ;;  %v32_v9 = vld [vmem:[%s749_s1 + $0x28] sm:$0xff] }
   0x3   :  { %v466_v7 = vpack.c.bf16 %v30_v6, %v29_v3  ;;  %v121_v10 = vld [vmem:[%s750_s3] sm:$0xff]  ;;  %v122_v11 = vld [vmem:[%s750_s3 + $0x8] sm:$0xff]  ;;  %v123_v13 = vld [vmem:[%s750_s3 + $0x10] sm:$0xff]  ;;  %v469_v15 = vpack.c.bf16 %v32_v9, %v31_v8 }
   0x4   :  { %464 = vmatpush3.bf16.msra.mxu0 %v463_v5  ;;  %v481_v12 = vpack.c.bf16 %v122_v11, %v121_v10  ;;  %v124_v14 = vld [vmem:[%s750_s3 + $0x18] sm:$0xff]  ;;  %v33_v16 = vld [vmem:[%s749_s1 + $0x30] sm:$0xff]  ;;  %v125_v19 = vld [vmem:[%s750_s3 + $0x20] sm:$0xff] }
   0x5   :  { %465 = vmatprep.subr.bf16.mxu0 %v531_v0  ;;  %v484_v17 = vpack.c.bf16 %v124_v14, %v123_v13  ;;  %v34_v18 = vld [vmem:[%s749_s1 + $0x38] sm:$0xff]  ;;  %v126_v20 = vld [vmem:[%s750_s3 + $0x28] sm:$0xff]  ;;  %v35_v22 = vld [vmem:[%s749_s1 + $0x40] sm:$0xff] }
   0x6   :  { %482 = vmatpush3.bf16.msra.mxu1 %v481_v12  ;;  %v472_v21 = vpack.c.bf16 %v34_v18, %v33_v16  ;;  %v487_v23 = vpack.c.bf16 %v126_v20, %v125_v19  ;;  %v36_v24 = vld [vmem:[%s749_s1 + $0x48] sm:$0xff]  ;;  %v127_v25 = vld [vmem:[%s750_s3 + $0x30] sm:$0xff]  ;;  %v128_v26 = vld [vmem:[%s750_s3 + $0x38] sm:$0xff] }
   0x7   :  { %483 = vmatprep.subr.bf16.mxu1 %v531_v0  ;;  %v475_v27 = vpack.c.bf16 %v36_v24, %v35_v22  ;;  %v37_v28 = vld [vmem:[%s749_s1 + $0x50] sm:$0xff]  ;;  %v490_v29 = vpack.c.bf16 %v128_v26, %v127_v25  ;;  %v38_v30 = vld [vmem:[%s749_s1 + $0x58] sm:$0xff]  ;;  %v129_v31 = vld [vmem:[%s750_s3 + $0x40] sm:$0xff] }
   0x8   :  { %467 = vmatpush3.bf16.msra.mxu0 %v466_v7  ;;  %v130_v32 = vld [vmem:[%s750_s3 + $0x48] sm:$0xff]  ;;  %v478_v33 = vpack.c.bf16 %v38_v30, %v37_v28  ;;  %v131_v35 = vld [vmem:[%s750_s3 + $0x50] sm:$0xff]  ;;  %v132_v36 = vld [vmem:[%s750_s3 + $0x58] sm:$0xff] }
   0x9   :  { %468 = vmatprep.subr.bf16.mxu0 %v531_v0  ;;  %v493_v34 = vpack.c.bf16 %v130_v32, %v129_v31  ;;  %v26_v37 = vld [vmem:[%s751_s0] sm:$0xff]  ;;  %v496_v38 = vpack.c.bf16 %v132_v36, %v131_v35  ;;  %v134_v40 = vld [vmem:[%s750_s3 + $0x68] sm:$0xff]  ;;  %v135_v42 = vld [vmem:[%s750_s3 + $0x70] sm:$0xff] }
   0xa   :  { %485 = vmatpush3.bf16.msra.mxu1 %v484_v17  ;;  %v133_v39 = vld [vmem:[%s750_s3 + $0x60] sm:$0xff]  ;;  %v136_v43 = vld [vmem:[%s750_s3 + $0x78] sm:$0xff]  ;;  %v216_v46 = vld [vmem:[%s752_s5 + $0x8] sm:$0xff] }
   0xb   :  { %486 = vmatprep.subr.bf16.mxu1 %v531_v0  ;;  %v499_v41 = vpack.c.bf16 %v134_v40, %v133_v39  ;;  %v502_v44 = vpack.c.bf16 %v136_v43, %v135_v42  ;;  %v215_v45 = vld [vmem:[%s752_s5] sm:$0xff]  ;;  %v217_v47 = vld [vmem:[%s752_s5 + $0x10] sm:$0xff]  ;;  %v218_v49 = vld [vmem:[%s752_s5 + $0x18] sm:$0xff] }
   0xc   :  { %470 = vmatpush3.bf16.msra.mxu0 %v469_v15  ;;  %v505_v48 = vpack.c.bf16 %v216_v46, %v215_v45  ;;  %v508_v50 = vpack.c.bf16 %v218_v49, %v217_v47  ;;  %v219_v51 = vld [vmem:[%s752_s5 + $0x20] sm:$0xff]  ;;  %v220_v52 = vld [vmem:[%s752_s5 + $0x28] sm:$0xff]  ;;  %v221_v54 = vld [vmem:[%s752_s5 + $0x30] sm:$0xff] }
   0xd   :  { %471 = vmatprep.subr.bf16.mxu0 %v531_v0  ;;  %v511_v53 = vpack.c.bf16 %v220_v52, %v219_v51  ;;  %v222_v55 = vld [vmem:[%s752_s5 + $0x38] sm:$0xff]  ;;  %v223_v57 = vld [vmem:[%s752_s5 + $0x40] sm:$0xff]  ;;  %v224_v58 = vld [vmem:[%s752_s5 + $0x48] sm:$0xff] }
   0xe   :  { %488 = vmatpush3.bf16.msra.mxu1 %v487_v23  ;;  %v514_v56 = vpack.c.bf16 %v222_v55, %v221_v54  ;;  %v517_v59 = vpack.c.bf16 %v224_v58, %v223_v57  ;;  %v225_v60 = vld [vmem:[%s752_s5 + $0x50] sm:$0xff]  ;;  %v226_v61 = vld [vmem:[%s752_s5 + $0x58] sm:$0xff]  ;;  %v227_v63 = vld [vmem:[%s752_s5 + $0x60] sm:$0xff] }
   0xf   :  { %489 = vmatprep.subr.bf16.mxu1 %v531_v0  ;;  %v520_v62 = vpack.c.bf16 %v226_v61, %v225_v60  ;;  %v228_v1 = vld [vmem:[%s752_s5 + $0x68] sm:$0xff]  ;;  %v314_v3 = vld [vmem:[%s753_s2] ss:$0 sm:$0xff]  ;;  %v229_v8 = vld [vmem:[%s752_s5 + $0x70] sm:$0xff] }
  0x10   :  { %473 = vmatpush3.bf16.msra.mxu0 %v472_v21  ;;  %v523_v2 = vpack.c.bf16 %v228_v1, %v227_v63  ;;  %v230_v9 = vld [vmem:[%s752_s5 + $0x78] sm:$0xff]  ;;  %v317_v15 = vld [vmem:[%s755_s6] ss:$0 sm:$0xff] }
  0x11   :  { %474 = vmatprep.subr.bf16.mxu0 %v531_v0  ;;  %v526_v10 = vpack.c.bf16 %v230_v9, %v229_v8 }
  0x12   :  { %491 = vmatpush3.bf16.msra.mxu1 %v490_v29 }
  0x13   :  { %492 = vmatprep.subr.bf16.mxu1 %v531_v0 }
  0x14   :  { %476 = vmatpush3.bf16.msra.mxu0 %v475_v27 }
  0x15   :  { %477 = vmatprep.subr.bf16.mxu0 %v531_v0 }
  0x16   :  { %494 = vmatpush3.bf16.msra.mxu1 %v493_v34 }
  0x17   :  { %495 = vmatprep.subr.bf16.mxu1 %v531_v0 }
  0x18   :  { %479 = vmatpush3.bf16.msra.mxu0 %v478_v33 }
  0x19   :  { %504 = vmatprep.subr.bf16.mxu0 %v531_v0 }
  0x1a   :  { %497 = vmatpush3.bf16.msra.mxu1 %v496_v38 }
  0x1b   :  { %390 = vmatmul.mubr.msk.f32.vlgmr.msra.gmra.mrb[0].mxu0 %vm46_vm1, %v26_v37  ;;  %498 = vmatprep.subr.bf16.mxu1 %v531_v0 }
  0x1c   :  { %459 = vmatprep.mubr.msk.f32.mxu0 %vm532_vm0, %v533_v4  ;;  %506 = vmatpush3.bf16.msra.mxu0 %v505_v48 }
  0x1d   :  { %507 = vmatprep.subr.bf16.mxu0 %v531_v0 }
  0x1e   :  { %500 = vmatpush3.bf16.msra.mxu1 %v499_v41 }
  0x1f   :  { %501 = vmatprep.subr.bf16.mxu1 %v531_v0 }
  0x20   :  { %509 = vmatpush3.bf16.msra.mxu0 %v508_v50 }
  0x21   :  { %510 = vmatprep.subr.bf16.mxu0 %v531_v0 }
  0x22   :  { %503 = vmatpush3.bf16.msra.mxu1 %v502_v44 }
  0x24   :  { %512 = vmatpush3.bf16.msra.mxu0 %v511_v53 }
  0x25   :  { %513 = vmatprep.subr.bf16.mxu0 %v531_v0 }
  0x28   :  { %515 = vmatpush3.bf16.msra.mxu0 %v514_v56 }
  0x29   :  { %516 = vmatprep.subr.bf16.mxu0 %v531_v0 }
  0x2c   :  { %518 = vmatpush3.bf16.msra.mxu0 %v517_v59 }
  0x2d   :  { %519 = vmatprep.subr.bf16.mxu0 %v531_v0 }
  0x30   :  { %521 = vmatpush3.bf16.msra.mxu0 %v520_v62 }
  0x31   :  { %522 = vmatprep.subr.bf16.mxu0 %v531_v0 }
  0x34   :  { %524 = vmatpush3.bf16.msra.mxu0 %v523_v2 }
  0x35   :  { %525 = vmatprep.subr.bf16.mxu0 %v531_v0  ;;  %v316_v0 = vld [vmem:[%s754_s4] ss:$0 sm:$0xff] }
  0x38   :  { %527 = vmatpush3.bf16.msra.mxu0 %v526_v10 }
  0xee   :  { %v116_v4 = vpop.f32.mrb[0].mxu0 }
  0xef   :  { %v117_v5 = vadd.f32 %v314_v3, %v116_v4  ;;  %v391_v6 = vpop.f32.mrb[1].mxu0 }
  0xf1   :  { %v120_v7 = vmax.f32 %v117_v5, 0.0 }
  0xf3   :  { %425 = vmatmul.mubr.f32.vlgmr.msra.gmra.mrb[0].mxu1 %v120_v7 }
 0x1c6   :  { %v210_v11 = vpop.f32.mrb[0].mxu1 }
 0x1c7   :  { %v211_v12 = vadd.f32 %v316_v0, %v210_v11  ;;  %v426_v13 = vpop.f32.mrb[1].mxu1 }
 0x1c9   :  { %v214_v14 = vmax.f32 %v211_v12, 0.0 }
 0x1cb   :  { %460 = vmatmul.mubr.f32.vlgmr.msra.gmra.mrb[2].mxu0 %v214_v14 }
 0x29e   :  { %v304_v16 = vpop.f32.mrb[2].mxu0 }
 0x29f   :  { %v305_v17 = vadd.f32 %v317_v15, %v304_v16  ;;  %v461_v18 = vpop.f32.mrb[3].mxu0 }
 0x2a1   :  { %309 = vst.msk [vmem:[%s756_s7] sm:$0xff] %vm308_vm2, %v305_v17 }

</bundles_post_ra>
